<compile_context>
chip_gen: v5e
topology: v5e:2x2
jax: 0.10.0
libtpu: 0.0.40
codegen_flags: <defaults>
</compile_context>

<pallas_src>
import functools

import jax
import jax.numpy as jnp
from jax import lax
from jax.experimental import pallas as pl
from jax.experimental.pallas import tpu as pltpu


def _weighted_ce_kernel(logits_ref, targets_ref, weights_ref, out_ref,
                        num_acc, den_acc, *, n_rows_total):
    i = pl.program_id(0)
    nsteps = pl.num_programs(0)

    @pl.when(i == 0)
    def _init():
        num_acc[...] = jnp.zeros_like(num_acc)
        den_acc[...] = jnp.zeros_like(den_acc)

    x = logits_ref[...].astype(jnp.float32)     # (T, C) — upcast on-chip
    t = targets_ref[...]                        # (T, 1) int32
    w = weights_ref[...].astype(jnp.float32)    # (1, C)
    T, C = x.shape

    # Row-validity mask for the (possibly partial) last tile.  Out-of-bounds
    # rows may contain garbage (even NaN bit patterns) -> scrub before exp/log.
    row = i * T + lax.broadcasted_iota(jnp.int32, (T, 1), 0)
    valid = row < n_rows_total                  # (T, 1) bool
    x = jnp.where(valid, x, 0.0)

    # Numerically stable log-softmax over the class (lane) axis.
    m = jnp.max(x, axis=-1, keepdims=True)      # (T, 1)
    z = x - m
    s = jnp.sum(jnp.exp(z), axis=-1, keepdims=True)
    logp = z - jnp.log(s)                       # (T, C)

    # One-hot gather of target log-prob and weight, fused: wl = onehot * w.
    # Out-of-range targets give an all-zero one-hot row and contribute nothing.
    class_ids = lax.broadcasted_iota(jnp.int32, (T, C), 1)
    onehot = (class_ids == t).astype(jnp.float32)              # (T, C)
    wl = onehot * w * valid.astype(jnp.float32)                # (T, C)

    num_rows = jnp.sum(wl * (-logp), axis=-1, keepdims=True)   # (T, 1)
    den_rows = jnp.sum(wl, axis=-1, keepdims=True)             # (T, 1)
    num_acc[...] += jnp.sum(num_rows, axis=0, keepdims=True)   # (1, 1)
    den_acc[...] += jnp.sum(den_rows, axis=0, keepdims=True)   # (1, 1)

    @pl.when(i == nsteps - 1)
    def _finalize():
        den = den_acc[...]
        safe = jnp.where(den != 0.0, den, 1.0)
        # TODO(synk): PyTorch's ignore_index semantics are not reproduced;
        # out-of-range targets are silently dropped and an all-zero total
        # weight returns 0 here instead of NaN.
        out_ref[...] = jnp.where(den != 0.0, num_acc[...] / safe, 0.0)


def _round_up(x, m):
    return ((x + m - 1) // m) * m


def _choose_tile_rows(n, c, itemsize):
    # ~4 MiB per logits block -> ~8 MiB double-buffered: well under v7x's
    # scoped VMEM default, still >= 2048 rows for small C (HBM roofline on
    # v5e/v6e per measured tile-size sweep).
    target_bytes = 4 * 1024 * 1024
    rows = target_bytes // max(1, c * itemsize)
    rows = int(max(8, min(2048, rows)))
    rows = (rows // 8) * 8                      # sublane multiple
    rows = min(rows, _round_up(n, 8))           # never wider than the batch
    return max(8, rows)


def weighted_cross_entropy(pred_spoof, is_spoof, weights, *, tile_rows=None):
    """Pallas equivalent of Loss(weights)(pred_spoof, is_spoof)."""
    n, c = pred_spoof.shape
    itemsize = jnp.dtype(pred_spoof.dtype).itemsize
    if tile_rows is None:
        tile_rows = _choose_tile_rows(n, c, itemsize)
    tile_rows = max(8, (int(tile_rows) // 8) * 8)
    grid = (pl.cdiv(n, tile_rows),)

    targets = is_spoof.astype(jnp.int32).reshape(n, 1)
    w = jnp.asarray(weights, jnp.float32).reshape(1, c)

    kernel = functools.partial(_weighted_ce_kernel, n_rows_total=n)

    out = pl.pallas_call(
        kernel,
        out_shape=jax.ShapeDtypeStruct((1, 1), jnp.float32),
        grid_spec=pltpu.PrefetchScalarGridSpec(
            num_scalar_prefetch=0,
            grid=grid,
            in_specs=[
                pl.BlockSpec((tile_rows, c), lambda i: (i, 0)),   # logits tile
                pl.BlockSpec((tile_rows, 1), lambda i: (i, 0)),   # targets tile
                pl.BlockSpec((1, c), lambda i: (0, 0)),           # class weights
            ],
            out_specs=pl.BlockSpec((1, 1), lambda i: (0, 0)),     # resident scalar
            scratch_shapes=[
                pltpu.VMEM((1, 1), jnp.float32),   # num accumulator
                pltpu.VMEM((1, 1), jnp.float32),   # den accumulator
            ],
        ),
        compiler_params=pltpu.CompilerParams(
            dimension_semantics=("arbitrary",),
        ),
        cost_estimate=pl.CostEstimate(
            flops=6 * n * c,
            transcendentals=n * (c + 1),
            bytes_accessed=n * c * itemsize + n * 4 + c * 4 + 4,
        ),
    )(pred_spoof, targets, w)
    return out[0, 0]


def _reference(pred, tgt, weights):
    # Pure-JAX reference matching torch.nn.CrossEntropyLoss(weight=weights).
    logp = jax.nn.log_softmax(pred.astype(jnp.float32), axis=-1)
    picked = jnp.take_along_axis(logp, tgt[:, None].astype(jnp.int32), axis=-1)[:, 0]
    w = jnp.asarray(weights, jnp.float32)[tgt]
    return jnp.sum(-w * picked) / jnp.sum(w)


if __name__ == "__main__":
    key = jax.random.PRNGKey(0)
    k1, k2 = jax.random.split(key)

    N, C = 16, 2                      # small spoof / not-spoof batch
    class_weights = [0.3, 0.7]        # deterministic "weights" arg of Loss.__init__

    pred_spoof = jax.random.normal(k1, (N, C), dtype=jnp.float32)
    is_spoof = jax.random.randint(k2, (N,), 0, C, dtype=jnp.int32)

    # tile_rows=8 -> 2 grid steps: exercises the init/accumulate/finalize path.
    loss = weighted_cross_entropy(pred_spoof, is_spoof, class_weights, tile_rows=8)
    loss = jax.block_until_ready(loss)

    ref = _reference(pred_spoof, is_spoof, class_weights)
    assert jnp.allclose(loss, ref, atol=1e-5, rtol=1e-5), (loss, ref)

    print("KERNEL_OK")
</pallas_src>

<mosaic_0001>
module attributes {stable_mosaic.version = 11 : i64} {
  func.func @_weighted_ce_kernel(%arg0: i32, %arg1: memref<8x2xf32, #tpu.memory_space<vmem>>, %arg2: memref<8x1xi32, #tpu.memory_space<vmem>>, %arg3: memref<1x2xf32, #tpu.memory_space<vmem>>, %arg4: memref<1x1xf32, #tpu.memory_space<vmem>>, %arg5: memref<1x1xf32, #tpu.memory_space<vmem>>, %arg6: memref<1x1xf32, #tpu.memory_space<vmem>>) attributes {dimension_semantics = [#tpu.dimension_semantics<arbitrary>], iteration_bounds = array<i64: 2>, scalar_prefetch = 0 : i64, scratch_operands = 2 : i64, tpu.core_type = #tpu.core_type<tc>, window_params = [{transform_indices = @transform_0, window_bounds = array<i64: 8, 2>}, {transform_indices = @transform_1, window_bounds = array<i64: 8, 1>}, {pipeline_mode = #tpu.pipeline_mode<synchronous>, transform_indices = @transform_2, window_bounds = array<i64: 1, 2>}, {pipeline_mode = #tpu.pipeline_mode<synchronous>, transform_indices = @transform_3, window_bounds = array<i64: 1, 1>}]} {
    %c0_i32 = arith.constant 0 : i32
    %0 = arith.cmpi eq, %arg0, %c0_i32 : i32
    %1 = arith.extui %0 : i1 to i32
    %c0_i32_0 = arith.constant 0 : i32
    %2 = arith.cmpi ne, %1, %c0_i32_0 : i32
    scf.if %2 {
      %cst_22 = arith.constant 0.000000e+00 : f32
      %57 = vector.broadcast %cst_22 : f32 to vector<1x1xf32>
      %c0_23 = arith.constant 0 : index
      %c0_24 = arith.constant 0 : index
      %58 = vector.load %arg5[%c0_23, %c0_24] : memref<1x1xf32, #tpu.memory_space<vmem>>, vector<1x1xf32>
      tpu.vector_store %arg5[%c0_23, %c0_24], %57 {strides = array<i32>} : memref<1x1xf32, #tpu.memory_space<vmem>>, vector<1x1xf32>,
      %cst_25 = arith.constant 0.000000e+00 : f32
      %59 = vector.broadcast %cst_25 : f32 to vector<1x1xf32>
      %c0_26 = arith.constant 0 : index
      %c0_27 = arith.constant 0 : index
      %60 = vector.load %arg6[%c0_26, %c0_27] : memref<1x1xf32, #tpu.memory_space<vmem>>, vector<1x1xf32>
      tpu.vector_store %arg6[%c0_26, %c0_27], %59 {strides = array<i32>} : memref<1x1xf32, #tpu.memory_space<vmem>>, vector<1x1xf32>,
    } else {
    }
    %c0 = arith.constant 0 : index
    %c0_1 = arith.constant 0 : index
    %3 = vector.load %arg1[%c0, %c0_1] : memref<8x2xf32, #tpu.memory_space<vmem>>, vector<8x2xf32>
    %c0_2 = arith.constant 0 : index
    %c0_3 = arith.constant 0 : index
    %4 = vector.load %arg2[%c0_2, %c0_3] : memref<8x1xi32, #tpu.memory_space<vmem>>, vector<8x1xi32>
    %c0_4 = arith.constant 0 : index
    %c0_5 = arith.constant 0 : index
    %5 = vector.load %arg3[%c0_4, %c0_5] : memref<1x2xf32, #tpu.memory_space<vmem>>, vector<1x2xf32>
    %c8_i32 = arith.constant 8 : i32
    %6 = arith.muli %arg0, %c8_i32 : i32
    %7 = tpu.iota {dimensions = array<i32: 0>} : vector<8x1xi32>
    %8 = vector.broadcast %6 : i32 to vector<8x1xi32>
    %9 = arith.addi %8, %7 : vector<8x1xi32>
    %c16_i32 = arith.constant 16 : i32
    %10 = vector.broadcast %c16_i32 : i32 to vector<8x1xi32>
    %11 = arith.cmpi slt, %9, %10 : vector<8x1xi32>
    %cst = arith.constant 0.000000e+00 : f32
    %12 = vector.shape_cast %11 : vector<8x1xi1> to vector<8x1xi1>
    %13 = vector.broadcast %12 : vector<8x1xi1> to vector<8x2xi1>
    %14 = vector.broadcast %cst : f32 to vector<8x2xf32>
    %15 = arith.select %13, %3, %14 : vector<8x2xi1>, vector<8x2xf32>
    %cst_6 = arith.constant dense<0xFF800000> : vector<8xf32>
    %16 = vector.multi_reduction <maximumf>, %15, %cst_6 [1] : vector<8x2xf32> to vector<8xf32>
    %17 = vector.shape_cast %16 : vector<8xf32> to vector<8x1xf32>
    %18 = vector.broadcast %17 : vector<8x1xf32> to vector<8x2xf32>
    %19 = arith.subf %15, %18 : vector<8x2xf32>
    %20 = math.exp %19 : vector<8x2xf32>
    %cst_7 = arith.constant dense<0.000000e+00> : vector<8xf32>
    %21 = vector.multi_reduction <add>, %20, %cst_7 [1] : vector<8x2xf32> to vector<8xf32>
    %22 = vector.shape_cast %21 : vector<8xf32> to vector<8x1xf32>
    %23 = math.log %22 : vector<8x1xf32>
    %24 = vector.broadcast %23 : vector<8x1xf32> to vector<8x2xf32>
    %25 = arith.subf %19, %24 : vector<8x2xf32>
    %26 = tpu.iota {dimensions = array<i32: 1>} : vector<8x2xi32>
    %27 = vector.broadcast %4 : vector<8x1xi32> to vector<8x2xi32>
    %28 = arith.cmpi eq, %26, %27 : vector<8x2xi32>
    %29 = arith.extui %28 : vector<8x2xi1> to vector<8x2xi32>
    %30 = arith.sitofp %29 : vector<8x2xi32> to vector<8x2xf32>
    %31 = vector.broadcast %5 : vector<1x2xf32> to vector<8x2xf32>
    %32 = arith.mulf %30, %31 : vector<8x2xf32>
    %33 = arith.extui %11 : vector<8x1xi1> to vector<8x1xi32>
    %34 = arith.sitofp %33 : vector<8x1xi32> to vector<8x1xf32>
    %35 = vector.broadcast %34 : vector<8x1xf32> to vector<8x2xf32>
    %36 = arith.mulf %32, %35 : vector<8x2xf32>
    %cst_8 = arith.constant 0.000000e+00 : f32
    %37 = vector.broadcast %cst_8 : f32 to vector<8x2xf32>
    %38 = arith.subf %37, %25 : vector<8x2xf32>
    %39 = arith.mulf %36, %38 : vector<8x2xf32>
    %cst_9 = arith.constant dense<0.000000e+00> : vector<8xf32>
    %40 = vector.multi_reduction <add>, %39, %cst_9 [1] : vector<8x2xf32> to vector<8xf32>
    %41 = vector.shape_cast %40 : vector<8xf32> to vector<8x1xf32>
    %cst_10 = arith.constant dense<0.000000e+00> : vector<8xf32>
    %42 = vector.multi_reduction <add>, %36, %cst_10 [1] : vector<8x2xf32> to vector<8xf32>
    %43 = vector.shape_cast %42 : vector<8xf32> to vector<8x1xf32>
    %c0_11 = arith.constant 0 : index
    %c0_12 = arith.constant 0 : index
    %44 = vector.load %arg5[%c0_11, %c0_12] : memref<1x1xf32, #tpu.memory_space<vmem>>, vector<1x1xf32>
    %cst_13 = arith.constant dense<0.000000e+00> : vector<1xf32>
    %45 = vector.multi_reduction <add>, %41, %cst_13 [0] : vector<8x1xf32> to vector<1xf32>
    %46 = vector.shape_cast %45 : vector<1xf32> to vector<1x1xf32>
    %47 = arith.addf %44, %46 : vector<1x1xf32>
    %c0_14 = arith.constant 0 : index
    %c0_15 = arith.constant 0 : index
    %48 = vector.load %arg5[%c0_14, %c0_15] : memref<1x1xf32, #tpu.memory_space<vmem>>, vector<1x1xf32>
    tpu.vector_store %arg5[%c0_14, %c0_15], %47 {strides = array<i32>} : memref<1x1xf32, #tpu.memory_space<vmem>>, vector<1x1xf32>,
    %c0_16 = arith.constant 0 : index
    %c0_17 = arith.constant 0 : index
    %49 = vector.load %arg6[%c0_16, %c0_17] : memref<1x1xf32, #tpu.memory_space<vmem>>, vector<1x1xf32>
    %cst_18 = arith.constant dense<0.000000e+00> : vector<1xf32>
    %50 = vector.multi_reduction <add>, %43, %cst_18 [0] : vector<8x1xf32> to vector<1xf32>
    %51 = vector.shape_cast %50 : vector<1xf32> to vector<1x1xf32>
    %52 = arith.addf %49, %51 : vector<1x1xf32>
    %c0_19 = arith.constant 0 : index
    %c0_20 = arith.constant 0 : index
    %53 = vector.load %arg6[%c0_19, %c0_20] : memref<1x1xf32, #tpu.memory_space<vmem>>, vector<1x1xf32>
    tpu.vector_store %arg6[%c0_19, %c0_20], %52 {strides = array<i32>} : memref<1x1xf32, #tpu.memory_space<vmem>>, vector<1x1xf32>,
    %c1_i32 = arith.constant 1 : i32
    %54 = arith.cmpi eq, %arg0, %c1_i32 : i32
    %55 = arith.extui %54 : i1 to i32
    %c0_i32_21 = arith.constant 0 : i32
    %56 = arith.cmpi ne, %55, %c0_i32_21 : i32
    scf.if %56 {
      %c0_22 = arith.constant 0 : index
      %c0_23 = arith.constant 0 : index
      %57 = vector.load %arg6[%c0_22, %c0_23] : memref<1x1xf32, #tpu.memory_space<vmem>>, vector<1x1xf32>
      %cst_24 = arith.constant 0.000000e+00 : f32
      %58 = vector.broadcast %cst_24 : f32 to vector<1x1xf32>
      %59 = arith.cmpf one, %57, %58 : vector<1x1xf32>
      %cst_25 = arith.constant 1.000000e+00 : f32
      %60 = vector.broadcast %cst_25 : f32 to vector<1x1xf32>
      %61 = arith.select %59, %57, %60 : vector<1x1xi1>, vector<1x1xf32>
      %cst_26 = arith.constant 0.000000e+00 : f32
      %62 = vector.broadcast %cst_26 : f32 to vector<1x1xf32>
      %63 = arith.cmpf one, %57, %62 : vector<1x1xf32>
      %c0_27 = arith.constant 0 : index
      %c0_28 = arith.constant 0 : index
      %64 = vector.load %arg5[%c0_27, %c0_28] : memref<1x1xf32, #tpu.memory_space<vmem>>, vector<1x1xf32>
      %65 = arith.divf %64, %61 : vector<1x1xf32>
      %cst_29 = arith.constant 0.000000e+00 : f32
      %66 = vector.broadcast %cst_29 : f32 to vector<1x1xf32>
      %67 = arith.select %63, %65, %66 : vector<1x1xi1>, vector<1x1xf32>
      %c0_30 = arith.constant 0 : index
      %c0_31 = arith.constant 0 : index
      %68 = vector.load %arg4[%c0_30, %c0_31] : memref<1x1xf32, #tpu.memory_space<vmem>>, vector<1x1xf32>
      tpu.vector_store %arg4[%c0_30, %c0_31], %67 {strides = array<i32>} : memref<1x1xf32, #tpu.memory_space<vmem>>, vector<1x1xf32>,
    } else {
    }
    return
  }
  func.func @transform_0(%arg0: i32) -> (i32, i32) {
    %c0_i32 = arith.constant 0 : i32
    %c0_i32_0 = arith.constant 0 : i32
    return %arg0, %c0_i32 : i32, i32
  }
  func.func @transform_1(%arg0: i32) -> (i32, i32) {
    %c0_i32 = arith.constant 0 : i32
    %c0_i32_0 = arith.constant 0 : i32
    return %arg0, %c0_i32 : i32, i32
  }
  func.func @transform_2(%arg0: i32) -> (i32, i32) {
    %c0_i32 = arith.constant 0 : i32
    %c0_i32_0 = arith.constant 0 : i32
    %c0_i32_1 = arith.constant 0 : i32
    return %c0_i32, %c0_i32_0 : i32, i32
  }
  func.func @transform_3(%arg0: i32) -> (i32, i32) {
    %c0_i32 = arith.constant 0 : i32
    %c0_i32_0 = arith.constant 0 : i32
    %c0_i32_1 = arith.constant 0 : i32
    return %c0_i32, %c0_i32_0 : i32, i32
  }
}

</mosaic_0001>

<bundles_post_ra>
// kernel: tpu_custom_call.1
= control target key start
LH: loop header
LB: loop body
LE: loop exit
PB: predicated region body
PF: predicated region fallthrough
CT: control target
= control target key end

     0   :  { %8 = vsyncpa [#allocation5], 0  ;;  %s435_s12 = smov 0   ;;  %s477_s0 = inlined_call_operand.vmem [shape: f32[16,2], index: 0, kind: input, shape index: {}]   ;;  %s478_s1 = inlined_call_operand.vmem [shape: s32[16,1], index: 1, kind: input, shape index: {}]   ;;  %s479_s2 = inlined_call_operand.vmem [shape: f32[1,2], index: 2, kind: input, shape index: {}]   ;;  %s480_s3 = inlined_call_operand.hbm [shape: f32[1,1], index: 3, kind: output, shape index: {}]  }
   0x1 LB: > { %s441_s13 = sadd.s32 4294967295, %s409_s12   ;;  %p332_p0 = scmp.ge.s32.totalorder %s409_s12, 1  ;;  %s409_s12 = sphi %s435_s12, %s14_s12  }
   0x2   : > { %p141_p1 = scmp.lt.s32.totalorder %s409_s12, 3 }
   0x4   : > { %p142_p2 = pnand %p332_p0, %p141_p1 }
   0x5   : > { %p163_p3 = scmp.lt.s32.totalorder (!%p142_p2), %s441_s13, 1  ;;  %p335_p4 = scmp.ne.s32.totalorder (!%p142_p2), %s441_s13, 0 }
   0x6   : > { %145 = sbr.rel (%p142_p2) target bundleno = 449 (0x1c1), region = 32 }
   0xb   : > { %s164_s14 = scalar_select %p163_p3, %s441_s13, 1 }
   0xc   : > { %174 = sbr.rel (%p335_p4) target bundleno = 20 (0x14), region = 36 }
   0xd   : > { %s333_s15 = sshll.u32 %s164_s14, 3 }
   0xe   : > { %s166_s18 = scalar_lea.vmem %s477_s0, %s333_s15  ;;  %s170_s21 = scalar_lea.vmem %s478_s1, %s333_s15 }
  0x11   : > { %vm175_vm0 = vcmask 0   ;;  %v411_v0 = vmov 0.0  }
  0x12   : > { %176 = vst.msk [vmem:[#allocation2] sm:$0x1] %vm175_vm0, %v411_v0 }
  0x13   : > { %177 = vst.msk [vmem:[#allocation3] sm:$0x1] %vm175_vm0, %v411_v0 }
  0x14 PF: > { %s336_s22 = sshll.u32 %s441_s13, 3  ;;  %v182_v1 = vlaneseq  ;;  %v178_v4 = vld [vmem:[%s166_s18] sm:$0xff]  ;;  %vm190_vm1 = vcmask 15360   ;;  %v412_v9 = vmov 0   ;;  %v413_v18 = vmov 0.0   ;;  %p339_p5 = scmp.ne.s32.totalorder %s441_s13, 1 }
  0x15   : > { %v184_v2 = vstv %s336_s22  ;;  %v179_v8 = vld [vmem:[%s170_s21] sm:$0xff]  ;;  %362 = vset.pattern.permute.xlu1 %v412_v9  ;;  %363 = vset.pattern.permute.xlu0 %v412_v9  ;;  %vm233_vm4 = vcmask 0  }
  0x16   : > { %v183_v3 = vshrl.u32 %v182_v1, 7  ;;  %206 = vperm.xlu1 %362, %v179_v8   ;;  %v204_v15 = vand.u32 127, %v182_v1  ;;  %v364_v17 = vld [vmem:[%s479_s2] ss:$0 sm:$0xff] }
  0x18   : > { %v185_v5 = vadd.s32 %v184_v2, %v183_v3 }
  0x19   : > { %v225_v46 = vld [vmem:[#allocation2] sm:$0x1] }
  0x1a   : > { %vm186_vm2 = vcmp.lt.s32.totalorder %v185_v5, 16  ;;  %v235_v37 = vld [vmem:[#allocation3] sm:$0x1] }
  0x1b   : > { %v189_v6 = vsel %vm186_vm2, %v178_v4, 0.0  ;;  %v338_v21 = vsel %vm186_vm2, 1.0, %v413_v18 }
  0x1c   : > { %v191_v7 = vsel %vm190_vm1, %v189_v6, -inf }
  0x1d   : > { %192 = vmax.xlane.f32.xlu0 %v191_v7 }
  0x88   : > { %v207_v16 = vpop.permute.xlu1 %206 }
  0x89   : > { %vm208_vm3 = vcmp.eq.s32.totalorder %v204_v15, %v207_v16 }
  0x8a   : > { %v337_v19 = vsel %vm208_vm3, 1.0, %v413_v18 }
  0x8b   : > { %v214_v20 = vmul.f32 %v364_v17, %v337_v19 }
  0x8d   : > { %v216_v22 = vmul.f32 %v338_v21, %v214_v20 }
  0x8f   : > { %v222_v23 = vsel %vm190_vm1, %v216_v22, 0.0 }
  0x90   : > { %v193_v10 = vpop.xlane.xlu0 %192  ;;  %223 = vadd.xlane.f32.xlu2 %v222_v23 }
  0x91   : > { %v194_v11 = vsub.f32 %v189_v6, %v193_v10 }
  0x93   : > { %v195_v12 = vmul.f32 1.442695, %v194_v11 }
  0x95   : > { %365 = vpow2.f32 %v195_v12 }
  0x9b   : > { %v366_v13 = vpop.eup %365 }
  0x9c   : > { %v197_v14 = vsel %vm190_vm1, %v366_v13, 0.0 }
  0x9d   : > { %198 = vadd.xlane.f32.xlu0 %v197_v14 }
 0x103   : > { %v224_v31 = vpop.xlane.xlu2 %223 }
 0x104   : > { %v236_v32 = vrot.slane %v224_v31, 4 }
 0x106   : > { %v237_v33 = vadd.f32 %v236_v32, %v224_v31 }
 0x108   : > { %v238_v34 = vrot.slane %v237_v33, 2 }
 0x10a   : > { %v239_v35 = vadd.f32 %v238_v34, %v237_v33 }
 0x10c   : > { %v240_v36 = vrot.slane %v239_v35, 1 }
 0x10e   : > { %v241_v38 = vadd.f32 %v240_v36, %v239_v35 }
 0x110   : > { %v199_v24 = vpop.xlane.xlu0 %198  ;;  %v242_v39 = vadd.f32 %v241_v38, %v235_v37 }
 0x111   : > { %367 = vlog2.f32 %v199_v24 }
 0x112   : > { %243 = vst.msk [vmem:[#allocation3] sm:$0x1] %vm233_vm4, %v242_v39 }
 0x117   : > { %v368_v25 = vpop.eup %367 }
 0x118   : > { %v201_v26 = vmul.f32 0.6931472, %v368_v25 }
 0x11a   : > { %v202_v27 = vsub.f32 %v194_v11, %v201_v26 }
 0x11c   : > { %v217_v28 = vsub.f32 0.0, %v202_v27 }
 0x11e   : > { %v218_v29 = vmul.f32 %v217_v28, %v216_v22 }
 0x120   : > { %v219_v30 = vsel %vm190_vm1, %v218_v29, 0.0 }
 0x121   : > { %220 = vadd.xlane.f32.xlu1 %v219_v30 }
 0x194   : > { %v221_v40 = vpop.xlane.xlu1 %220 }
 0x195   : > { %v226_v41 = vrot.slane %v221_v40, 4 }
 0x197   : > { %v227_v42 = vadd.f32 %v226_v41, %v221_v40 }
 0x199   : > { %v228_v43 = vrot.slane %v227_v42, 2 }
 0x19b   : > { %v229_v44 = vadd.f32 %v228_v43, %v227_v42 }
 0x19d   : > { %v230_v45 = vrot.slane %v229_v44, 1 }
 0x19f   : > { %v231_v47 = vadd.f32 %v230_v45, %v229_v44  ;;  %247 = sbr.rel (%p339_p5) target bundleno = 444 (0x1bc), region = 40 }
 0x1a1   : > { %v232_v48 = vadd.f32 %v231_v47, %v225_v46 }
 0x1a3   : > { %234 = vst.msk [vmem:[#allocation2] sm:$0x1] %vm233_vm4, %v232_v48 }
 0x1a4   : > { %v248_v49 = vld [vmem:[#allocation3] sm:$0x1] }
 0x1a5   : > { %vm249_vm5 = vcmp.ne.f32.partialorder %v248_v49, 0.0 }
 0x1a6   : > { %v250_v50 = vsel %vm249_vm5, %v248_v49, 1.0 }
 0x1a7   : > { %369 = vrcp.f32 %v250_v50  ;;  %v263_v53 = vand.u32 2147483648, %v250_v50  ;;  %vm257_vm6 = vweird.f32 %v250_v50  ;;  %v261_v55 = vand.u32 2147483647, %v250_v50 }
 0x1a9   : > { %v264_v57 = vor.u32 1.1754944e-38, %v263_v53  ;;  %vm262_vm9 = vcmp.eq.f32.partialorder %v261_v55, 8.507059e+37 }
 0x1aa   : > { %v251_v59 = vld [vmem:[#allocation2] sm:$0x1] }
 0x1ad   : > { %v370_v51 = vpop.eup %369 }
 0x1ae   : > { %v253_v52 = vmul.f32 %v370_v51, %v250_v50  ;;  %vm258_vm7 = vweird.f32 %v370_v51 }
 0x1af   : > { %vm259_vm8 = vmor %vm257_vm6, %vm258_vm7 }
 0x1b0   : > { %v254_v54 = vsub.f32 1.0, %v253_v52 }
 0x1b2   : > { %v255_v56 = vmul.f32 %v370_v51, %v254_v54 }
 0x1b4   : > { %v256_v58 = vadd.f32 %v370_v51, %v255_v56 }
 0x1b6   : > { %v260_v60 = vsel %vm259_vm8, %v370_v51, %v256_v58 }
 0x1b7   : > { %v265_v61 = vsel %vm262_vm9, %v264_v57, %v260_v60 }
 0x1b8   : > { %v266_v62 = vmul.f32 %v265_v61, %v251_v59 }
 0x1ba   : > { %v267_v63 = vsel %vm249_vm5, %v266_v62, 0.0 }
 0x1bb   : > { %268 = vst.msk [vmem:[#allocation4] sm:$0x1] %vm233_vm4, %v267_v63 }
 0x1bc PF: > { %p348_p6 = scmp.eq.s32.totalorder %s441_s13, 1  ;;  %s414_s25 = smov [#allocation4]  }
 0x1bd   : > { %s275_s26 = sshll.u32 %s414_s25, 4  ;;  %s277_s29 = sshll.u32 %s480_s3, 4  ;;  %s276_s26 = int_to_ptr.vmem [resolvable:$true] %s275_s26  ;;  %s278_s29 = int_to_ptr.hbm [resolvable:$true] %s277_s29 }
 0x1be   : > { %345 = dma.vmem_to_hbm [thread:$0]  (%p348_p6), %s276_s26, 16, %s278_s29, [#allocation5]  }
 0x1bf   : > { %404 = dma.done.wait (%p348_p6), [#allocation5], 16  }
 0x1c0   : > { %406 = vsyncadd (%p348_p6), [#allocation5], 4294967280 }
 0x1c1 PF: > { %s14_s12 = sadd.s32 1, %s409_s12  }
 0x1c2   : > { %p11_p7 = scmp.ge.s32.totalorder %s14_s12, 4  }
 0x1c4   :  { %13 = sbr.rel (!%p11_p7) target bundleno = 1 (0x1), region = 70 }
 0x1c9   :  { %291 = vsyncpa [#allocation5], 1 }
 0x1ca   :  { %293 = vsyncpa [#allocation5 + $0x1], 1 }

</bundles_post_ra>
